<compile_context>
chip_gen: v6e
topology: v6e:2x2x1
jax: 0.10.0
libtpu: 0.0.40
codegen_flags: <defaults>
</compile_context>

<pallas_src>
import functools

import jax
import jax.numpy as jnp
from jax.experimental import pallas as pl
from jax.experimental.pallas import tpu as pltpu


# ----------------------------------------------------------------------------
# Device-aware VMEM budget (computed once, outside jit).
# ----------------------------------------------------------------------------
def _vmem_capacity_bytes():
    try:
        info = pltpu.get_tpu_info()
        cap = getattr(info, "vmem_capacity_bytes", None)
        if cap:
            return int(cap)
    except Exception:
        pass
    # Safe lower bound: v7x has 64 MiB per TensorCore (v5e/v6e have 128 MiB).
    return 64 * 1024 * 1024


_VMEM_CAP = _vmem_capacity_bytes()
# Leave headroom for Mosaic internals; never ask for more than 96 MiB.
_VMEM_LIMIT = min(int(_VMEM_CAP * 3 // 4), 96 * 1024 * 1024)


# ----------------------------------------------------------------------------
# Kernels
# ----------------------------------------------------------------------------
def _linear_kernel_inplace(x_ref, w_ref, b_ref, o_ref):
    """f32 output: accumulate directly into the K-resident output block."""
    k = pl.program_id(2)

    @pl.when(k == 0)
    def _init():
        # Seed with the bias (broadcast over rows); added exactly once.
        o_ref[...] = jnp.zeros_like(o_ref) + b_ref[...]

    o_ref[...] += jnp.dot(
        x_ref[...], w_ref[...], preferred_element_type=jnp.float32
    )


def _linear_kernel_scratch(x_ref, w_ref, b_ref, o_ref, acc_ref):
    """Narrow output dtype: f32 VMEM accumulator, cast once at finalize."""
    k = pl.program_id(2)

    @pl.when(k == 0)
    def _init():
        acc_ref[...] = jnp.zeros_like(acc_ref) + b_ref[...]

    acc_ref[...] += jnp.dot(
        x_ref[...], w_ref[...], preferred_element_type=jnp.float32
    )

    @pl.when(k == pl.num_programs(2) - 1)
    def _finalize():
        o_ref[...] = acc_ref[...].astype(o_ref.dtype)


# ----------------------------------------------------------------------------
# Tile selection
# ----------------------------------------------------------------------------
def _round_up(x, m):
    return ((x + m - 1) // m) * m


def _pick_tile(dim, requested, align):
    """Return (tile, padded_dim) for one axis.

    If the whole dim fits the request, use it as a single full-extent block
    (no alignment requirement, no padding).  Otherwise round the dim up to
    `align` and pick the largest `align`-multiple divisor <= requested.
    """
    if dim <= requested:
        return dim, dim
    padded = _round_up(dim, align)
    best = align
    t = align
    while t <= padded:
        if padded % t == 0 and t <= requested:
            best = t
        t += align
    return best, padded


def _select_tiles(B, In, Out, in_dtype, out_dtype, tm, tn, tk, use_scratch):
    sub_m = 16 if jnp.dtype(in_dtype) == jnp.dtype(jnp.bfloat16) else 8
    in_bytes = jnp.dtype(in_dtype).itemsize
    out_bytes = jnp.dtype(out_dtype).itemsize

    # Round user-requested tiles up to hardware multiples.
    tm = max(sub_m, _round_up(tm, sub_m))
    tn = max(128, _round_up(tn, 128))
    tk = max(128, _round_up(tk, 128))

    while True:
        tile_m, Bp = _pick_tile(B, tm, sub_m)
        tile_n, Np = _pick_tile(Out, tn, 128)
        tile_k, Kp = _pick_tile(In, tk, 128)
        vmem = (
            2 * (tile_m * tile_k + tile_k * tile_n) * in_bytes  # x, w (2x buf)
            + 2 * tile_m * tile_n * out_bytes                   # out (2x buf)
            + 2 * tile_n * 4                                    # bias (2x buf)
            + (tile_m * tile_n * 4 if use_scratch else 0)       # f32 acc
        )
        if vmem <= _VMEM_LIMIT or (tm == sub_m and tn == 128 and tk == 128):
            break
        # Shrink the largest requested tile and retry.
        if tk >= max(tm, tn):
            tk = max(128, tk // 2)
        elif tn >= tm:
            tn = max(128, tn // 2)
        else:
            tm = max(sub_m, tm // 2)

    # v7x has 2 TensorCores: expose >= 2 parallel (M, N) tiles when feasible.
    if (Bp // tile_m) * (Np // tile_n) < 2 and Out >= 256:
        tile_n, Np = _pick_tile(Out, max(128, _round_up(Out, 128) // 2), 128)

    return tile_m, tile_n, tile_k, Bp, Np, Kp


# ----------------------------------------------------------------------------
# Forward wrapper
# ----------------------------------------------------------------------------
@functools.partial(jax.jit, static_argnames=("tm", "tn", "tk", "mxu_dtype"))
def linear_forward(x, w_t, b, *, tm=512, tn=512, tk=1024, mxu_dtype=jnp.bfloat16):
    """out = x @ w_t + b  (torch nn.Linear forward with w_t = weight.T).

    x:   [B, In]
    w_t: [In, Out]
    b:   [Out] or [1, Out]
    """
    B, In = x.shape
    Out = w_t.shape[1]
    out_dtype = x.dtype

    if mxu_dtype is not None:
        x = x.astype(mxu_dtype)
        w_t = w_t.astype(mxu_dtype)
    in_dtype = x.dtype
    bias = b.reshape(1, Out).astype(jnp.float32)

    use_scratch = out_dtype != jnp.float32
    tile_m, tile_n, tile_k, Bp, Np, Kp = _select_tiles(
        B, In, Out, in_dtype, out_dtype, tm, tn, tk, use_scratch
    )

    # Pad only when a dim is genuinely ragged for the chosen tiling; for
    # aligned / full-extent tiles no pad ops are emitted at all.
    if Bp != B or Kp != In:
        x = jnp.pad(x, ((0, Bp - B), (0, Kp - In)))
    if Kp != In or Np != Out:
        w_t = jnp.pad(w_t, ((0, Kp - In), (0, Np - Out)))
    if Np != Out:
        bias = jnp.pad(bias, ((0, 0), (0, Np - Out)))

    grid = (Bp // tile_m, Np // tile_n, Kp // tile_k)

    kernel = _linear_kernel_scratch if use_scratch else _linear_kernel_inplace
    scratch = (
        [pltpu.VMEM((tile_m, tile_n), jnp.float32)] if use_scratch else []
    )

    out = pl.pallas_call(
        kernel,
        out_shape=jax.ShapeDtypeStruct((Bp, Np), out_dtype),
        grid=grid,
        in_specs=[
            pl.BlockSpec((tile_m, tile_k), lambda i, j, k: (i, k)),
            pl.BlockSpec((tile_k, tile_n), lambda i, j, k: (k, j)),
            pl.BlockSpec((1, tile_n), lambda i, j, k: (0, j)),
        ],
        out_specs=pl.BlockSpec((tile_m, tile_n), lambda i, j, k: (i, j)),
        scratch_shapes=scratch,
        compiler_params=pltpu.CompilerParams(
            dimension_semantics=("parallel", "parallel", "arbitrary"),
            vmem_limit_bytes=_VMEM_LIMIT,
        ),
    )(x, w_t, bias)

    if Bp != B or Np != Out:
        out = out[:B, :Out]
    return out


def init_params(key, input_size, output_size, dtype=jnp.float32):
    # Deterministic init mimicking nn.Linear's uniform(-1/sqrt(in), 1/sqrt(in)).
    kw, kb = jax.random.split(key)
    bound = 1.0 / (input_size ** 0.5)
    # torch weight is [out, in]; we store the transpose [in, out] for the kernel.
    w_t = jax.random.uniform(kw, (input_size, output_size), dtype, -bound, bound)
    b = jax.random.uniform(kb, (1, output_size), dtype, -bound, bound)
    return w_t, b


if __name__ == "__main__":
    key = jax.random.PRNGKey(0)
    k_x, k_p, k_x2, k_p2 = jax.random.split(key, 4)

    # --- Small case matching the toy Model(input_size, output_size) test ---
    # Aligned-enough small shapes: full-extent blocks, no padding, grid (1,1,1).
    batch, input_size, output_size = 8, 32, 64
    x = jax.random.normal(k_x, (batch, input_size), jnp.float32)
    w_t, b = init_params(k_p, input_size, output_size)

    ref = x @ w_t + b

    # Default bf16-MXU path (f32 accumulation).
    out = linear_forward(x, w_t, b)
    jax.block_until_ready(out)
    assert out.shape == (batch, output_size)
    assert jnp.allclose(out, ref, atol=2e-2, rtol=2e-2)

    # Full-f32 path for tighter parity.
    out_f32 = linear_forward(x, w_t, b, mxu_dtype=None)
    jax.block_until_ready(out_f32)
    assert jnp.allclose(out_f32, ref, atol=5e-3, rtol=5e-3)

    # --- Ragged case exercising K-axis accumulation + minimal padding ---
    B2, In2, Out2 = 16, 160, 96
    x2 = jax.random.normal(k_x2, (B2, In2), jnp.float32)
    w2, b2 = init_params(k_p2, In2, Out2)

    out2 = linear_forward(x2, w2, b2, tm=8, tn=128, tk=128)  # grid K = 2
    jax.block_until_ready(out2)
    ref2 = jnp.dot(x2, w2, precision=jax.lax.Precision.HIGHEST) + b2
    assert out2.shape == (B2, Out2)
    assert jnp.allclose(out2, ref2, atol=2e-2, rtol=2e-2)

    print("KERNEL_OK")
</pallas_src>

<mosaic_0001>
module attributes {stable_mosaic.version = 11 : i64} {
  func.func @_linear_kernel_inplace(%arg0: i32, %arg1: i32, %arg2: i32, %arg3: memref<8x32xbf16, #tpu.memory_space<vmem>>, %arg4: memref<32x64xbf16, #tpu.memory_space<vmem>>, %arg5: memref<1x64xf32, #tpu.memory_space<vmem>>, %arg6: memref<8x64xf32, #tpu.memory_space<vmem>>) attributes {dimension_semantics = [#tpu.dimension_semantics<parallel>, #tpu.dimension_semantics<parallel>, #tpu.dimension_semantics<arbitrary>], iteration_bounds = array<i64: 1, 1, 1>, scalar_prefetch = 0 : i64, scratch_operands = 0 : i64, tpu.core_type = #tpu.core_type<tc>, window_params = [{transform_indices = @transform_0, window_bounds = array<i64: 8, 32>}, {transform_indices = @transform_1, window_bounds = array<i64: 32, 64>}, {transform_indices = @transform_2, window_bounds = array<i64: 1, 64>}, {transform_indices = @transform_3, window_bounds = array<i64: 8, 64>}]} {
    %c0_i32 = arith.constant 0 : i32
    %0 = arith.cmpi eq, %arg2, %c0_i32 : i32
    %1 = arith.extui %0 : i1 to i32
    %c0_i32_0 = arith.constant 0 : i32
    %2 = arith.cmpi ne, %1, %c0_i32_0 : i32
    scf.if %2 {
      %cst_8 = arith.constant 0.000000e+00 : f32
      %9 = vector.broadcast %cst_8 : f32 to vector<8x64xf32>
      %c0_9 = arith.constant 0 : index
      %c0_10 = arith.constant 0 : index
      %10 = vector.load %arg5[%c0_9, %c0_10] : memref<1x64xf32, #tpu.memory_space<vmem>>, vector<1x64xf32>
      %11 = vector.broadcast %10 : vector<1x64xf32> to vector<8x64xf32>
      %12 = arith.addf %9, %11 : vector<8x64xf32>
      %c0_11 = arith.constant 0 : index
      %c0_12 = arith.constant 0 : index
      %13 = vector.load %arg6[%c0_11, %c0_12] : memref<8x64xf32, #tpu.memory_space<vmem>>, vector<8x64xf32>
      tpu.vector_store %arg6[%c0_11, %c0_12], %12 {strides = array<i32>} : memref<8x64xf32, #tpu.memory_space<vmem>>, vector<8x64xf32>,
    } else {
    }
    %c0 = arith.constant 0 : index
    %c0_1 = arith.constant 0 : index
    %3 = vector.load %arg6[%c0, %c0_1] : memref<8x64xf32, #tpu.memory_space<vmem>>, vector<8x64xf32>
    %c0_2 = arith.constant 0 : index
    %c0_3 = arith.constant 0 : index
    %4 = vector.load %arg3[%c0_2, %c0_3] : memref<8x32xbf16, #tpu.memory_space<vmem>>, vector<8x32xbf16>
    %c0_4 = arith.constant 0 : index
    %c0_5 = arith.constant 0 : index
    %5 = vector.load %arg4[%c0_4, %c0_5] : memref<32x64xbf16, #tpu.memory_space<vmem>>, vector<32x64xbf16>
    %cst = arith.constant dense<0.000000e+00> : vector<8x64xf32>
    %6 = tpu.matmul %4, %5, %cst {dimension_numbers = #tpu.dot_dimension_numbers<[1], [0], [0], [1], [0, 0, 1, 1], [], []>} : vector<8x32xbf16>, vector<32x64xbf16>, vector<8x64xf32> -> vector<8x64xf32>
    %7 = arith.addf %3, %6 : vector<8x64xf32>
    %c0_6 = arith.constant 0 : index
    %c0_7 = arith.constant 0 : index
    %8 = vector.load %arg6[%c0_6, %c0_7] : memref<8x64xf32, #tpu.memory_space<vmem>>, vector<8x64xf32>
    tpu.vector_store %arg6[%c0_6, %c0_7], %7 {strides = array<i32>} : memref<8x64xf32, #tpu.memory_space<vmem>>, vector<8x64xf32>,
    return
  }
  func.func @transform_0(%arg0: i32, %arg1: i32, %arg2: i32) -> (i32, i32) {
    %c0_i32 = arith.constant 0 : i32
    return %arg0, %arg2 : i32, i32
  }
  func.func @transform_1(%arg0: i32, %arg1: i32, %arg2: i32) -> (i32, i32) {
    %c0_i32 = arith.constant 0 : i32
    return %arg2, %arg1 : i32, i32
  }
  func.func @transform_2(%arg0: i32, %arg1: i32, %arg2: i32) -> (i32, i32) {
    %c0_i32 = arith.constant 0 : i32
    %c0_i32_0 = arith.constant 0 : i32
    return %c0_i32, %arg1 : i32, i32
  }
  func.func @transform_3(%arg0: i32, %arg1: i32, %arg2: i32) -> (i32, i32) {
    %c0_i32 = arith.constant 0 : i32
    return %arg0, %arg1 : i32, i32
  }
}

</mosaic_0001>

<bundles_post_ra>
// kernel: linear_forward.1
= control target key start
LH: loop header
LB: loop body
LE: loop exit
PB: predicated region body
PF: predicated region fallthrough
CT: control target
= control target key end

     0   :  { %v151_v1 = vmov 0.0   ;;  %vm152_vm0 = vmmov 0   ;;  %vm28_vm1 = vcmask 523264   ;;  %s189_s0 = inlined_call_operand.vmem [shape: bf16[8,32], index: 0, kind: input, shape index: {}]   ;;  %s190_s1 = inlined_call_operand.vmem [shape: bf16[32,64], index: 1, kind: input, shape index: {}]   ;;  %s191_s2 = inlined_call_operand.vmem [shape: f32[1,64], index: 2, kind: input, shape index: {}]   ;;  %s192_s3 = inlined_call_operand.hbm [shape: f32[8,64], index: 3, kind: output, shape index: {}]  }
   0x1   :  { %v127_v0 = vld [vmem:[%s190_s1 + $0x8] sm:$0xff]   ;;  %116 = vmatprep.subr.bf16.mxu0 %v151_v1  ;;  %v128_v2 = vld [vmem:[%s190_s1] sm:$0xff]   ;;  %120 = vmatprep.mubr.msk.bf16.mxu0 %vm152_vm0, %v151_v1 }
   0x2   :  { %117 = vmatpush3.bf16.msra.mxu0 %v127_v0  ;;  %v109_v3 = vld [vmem:[%s191_s2] ss:$0 sm:$0xff] }
   0x3   :  { %118 = vmatprep.subr.bf16.mxu0 %v151_v1  ;;  %29 = vst.msk [vmem:[#allocation2] sm:$0xff] %vm28_vm1, %v109_v3 }
   0x4   :  { %8 = vsyncpa [#allocation3], 0  ;;  %v31_v4 = vld [vmem:[%s189_s0] sm:$0xf]  ;;  %vm48_vm2 = vcmask 261120   ;;  %s153_s20 = smov [#allocation2]  }
   0x5   :  { %s101_s1 = sshll.u32 %s153_s20, 4  ;;  %s102_s1 = int_to_ptr.vmem [resolvable:$true] %s101_s1 }
   0x6   :  { %119 = vmatpush3.bf16.msra.mxu0 %v128_v2  ;;  %s129_s2 = scalar_lea.vmem %s102_s1, 128  ;;  %p134_p1 = scmp.lt.s32.totalorder %s102_s1, %s102_s1 }
   0x7   :  { %p130_p0 = scmp.ne.s32.totalorder %s102_s1, %s129_s2  ;;  %p135_p2 = scmp.lt.s32.totalorder %s129_s2, %s129_s2 }
   0x9   :  { %121 = vmatmul.mubr.msk.bf16.vlgmr.msra.gmra.mxu0 %vm48_vm2, %v31_v4  ;;  %p136_p3 = por %p135_p2, %p134_p1 }
   0xa   :  { %v30_v5 = vld [vmem:[#allocation2] sm:$0xff] }
   0xb   :  { %p137_p4 = pnand %p136_p3, %p130_p0 }
  0xc9   :  { %v86_v6 = vpop.f32.mrf.mxu0 }
  0xca   :  { %v92_v7 = vadd.f32 %v86_v6, %v30_v5 }
  0xcb   :  { %v122_v8 = vpop.f32.mrf.mxu0 }
  0xcc   :  { %94 = vst.msk [vmem:[#allocation2] sm:$0xff] %vm28_vm1, %v92_v7 }
  0xcd   :  { %v89_v9 = vpop.f32.mrf.mxu0 }
  0xce   :  { %140 = shalt.err (!%p137_p4)
}
  0xcf   :  { %104 = dma.vmem_to_hbm [thread:$0]  %s102_s1, 128, %s192_s3, [#allocation3]   ;;  %v123_v10 = vpop.f32.mrf.mxu0 }
  0xd0   :  { %149 = dma.done.wait [#allocation3], 128  }
  0xd1   :  { %150 = vsyncadd [#allocation3], 4294967168 }
  0xd2   :  { %108 = vsyncpa [#allocation3], 1 }

</bundles_post_ra>
